<compile_context>
chip_gen: v5e
topology: v5e:2x2
jax: 0.10.0
libtpu: 0.0.40
codegen_flags: <defaults>
</compile_context>

<pallas_src>
import numpy as np
import jax
import jax.numpy as jnp
from jax.experimental import pallas as pl
from jax.experimental.pallas import tpu as pltpu


def transition_kernel(x_ref, scale_ref, bias_ref, w_ref, o_ref):
    # x_ref:     (1, 4, TMo, C) bf16 — the 4 positions of each 2x2 pool window
    # scale_ref: (1, C) f32           folded BN scale  (gamma / sqrt(var + eps))
    # bias_ref:  (1, C) f32           folded BN bias   (beta - mean * scale)
    # w_ref:     (C, O_pad) bf16      1x1 conv weight^T, pre-scaled by 0.25,
    #                                 lane-padded to O_pad
    # o_ref:     (1, TMo, O_pad) bf16
    s = scale_ref[...]                                   # (1, C) f32
    b = bias_ref[...]                                    # (1, C) f32
    # BN + ReLU per window position in f32 (v5e-safe), folded into a running
    # accumulator to keep only ~2 live (TMo, C) f32 temporaries.
    acc = jnp.maximum(x_ref[0, 0, :, :].astype(jnp.float32) * s + b, 0.0)
    acc = acc + jnp.maximum(x_ref[0, 1, :, :].astype(jnp.float32) * s + b, 0.0)
    acc = acc + jnp.maximum(x_ref[0, 2, :, :].astype(jnp.float32) * s + b, 0.0)
    acc = acc + jnp.maximum(x_ref[0, 3, :, :].astype(jnp.float32) * s + b, 0.0)
    # 2x2 average pool == sum over the 4 stacked window positions; the 0.25
    # divisor is folded into w.  1x1 conv as a single MXU matmul (bf16
    # operands, f32 accumulation), stored lane-dense in bf16.
    o_ref[0] = jnp.dot(acc.astype(jnp.bfloat16), w_ref[...],
                       preferred_element_type=jnp.float32).astype(o_ref.dtype)


def _step_vmem_bytes(tmo, c, o_pad):
    """Per-grid-step VMEM footprint using *padded* layouts (last dim to 128
    lanes, second-to-last to the dtype's sublane packing), double-buffered
    pipeline blocks plus in-kernel f32 temporaries."""
    c_lane = ((max(c, 128) + 127) // 128) * 128
    tmo_bf16 = ((tmo + 15) // 16) * 16          # bf16 packs 16 rows / vreg
    tmo_f32 = ((tmo + 7) // 8) * 8
    c_sub_bf16 = ((c + 15) // 16) * 16
    x_blk = 4 * tmo_bf16 * c_lane * 2           # bf16 activation block
    out_blk = tmo_bf16 * o_pad * 2              # bf16 output block
    w_blk = c_sub_bf16 * o_pad * 2              # bf16 weight (grid-invariant)
    sb_blk = 2 * 8 * c_lane * 4                 # scale + bias (f32, (1, C))
    temps = 3 * tmo_f32 * c_lane * 4            # live f32 temporaries in-kernel
    return 2 * (x_blk + out_blk + w_blk + sb_blk) + temps


def _spatial_tile_target(c, o_pad, budget_bytes=36 * 1024 * 1024, cap=2048):
    """Largest multiple-of-16 spatial tile whose per-step VMEM footprint fits
    the budget (keeps the same tiling inside v7x's 64 MiB VMEM)."""
    t = cap
    while t > 16 and _step_vmem_bytes(t, c, o_pad) > budget_bytes:
        t -= 16
    return t


def _choose_spatial_tiling(howo, target):
    """Returns (TMo, M_pad): TMo divides M_pad, M_pad >= howo."""
    if howo <= target:
        return howo, howo                       # full-extent block (always legal)
    best = 0
    t = 16
    while t <= target:                          # largest mult-of-16 divisor
        if howo % t == 0:
            best = t
        t += 16
    if best:
        return best, howo
    tmo = max(16, target)                       # no divisor: pad spatial dim
    m_pad = ((howo + tmo - 1) // tmo) * tmo
    return tmo, m_pad


def transition_forward(x_nchw, gamma, beta, running_mean, running_var,
                       select_indexes, conv_w, eps=1e-5):
    N, Cin, H, W = x_nchw.shape
    O = conv_w.shape[0]
    assert H % 2 == 0 and W % 2 == 0, "avg_pool2d(kernel_size=2) path assumes even H, W"
    Ho, Wo = H // 2, W // 2
    HoWo = Ho * Wo

    # Fold inference-mode BatchNorm into per-channel scale + bias (f32).
    scale = gamma / jnp.sqrt(running_var + eps)
    bias = beta - running_mean * scale

    # ChannelSelection: static gather (indexes must be concrete — do NOT jit
    # this wrapper with `select_indexes` as a traced argument).
    sel = np.flatnonzero(np.asarray(select_indexes))
    C = int(sel.size)
    scale = scale[sel]
    bias = bias[sel]
    x_sel = x_nchw[:, sel, :, :]

    # NCHW -> (N, 4, Ho*Wo, C): stack the four 2x2-window positions on a
    # leading axis (single XLA transpose, fused with the bf16 downcast so the
    # kernel's activation stream is half-width).
    x_win = x_sel.reshape(N, C, Ho, 2, Wo, 2)
    x_win = jnp.transpose(x_win, (0, 3, 5, 2, 4, 1))     # (N, di, dj, Ho, Wo, C)
    x_win = x_win.reshape(N, 4, HoWo, C).astype(jnp.bfloat16)

    # 1x1 conv weight (O, C, 1, 1) -> (C, O), pool divisor 0.25 folded in,
    # zero-padded to lane-dense O_pad (mult of 128), cast to bf16 for the MXU.
    O_pad = max(128, ((O + 127) // 128) * 128)
    w = conv_w.reshape(O, C).T.astype(jnp.float32) * 0.25
    w = jnp.pad(w, ((0, 0), (0, O_pad - O))).astype(jnp.bfloat16)

    # Spatial tiling from the padded-layout VMEM model (v7x-safe budget).
    target = _spatial_tile_target(C, O_pad)
    TMo, M_pad = _choose_spatial_tiling(HoWo, target)
    n_tiles = M_pad // TMo
    if M_pad > HoWo:
        x_win = jnp.pad(x_win, ((0, 0), (0, 0), (0, M_pad - HoWo), (0, 0)))

    # Explicit VMEM budget: accurate padded-layout estimate + headroom, capped
    # at 48 MiB so Mosaic keeps scratch/semaphore headroom on v7x (64 MiB).
    vmem_bytes = int(min(_step_vmem_bytes(TMo, C, O_pad) + (8 << 20), 48 << 20))

    out_flat = pl.pallas_call(
        transition_kernel,
        out_shape=jax.ShapeDtypeStruct((N, M_pad, O_pad), jnp.bfloat16),
        grid=(N, n_tiles),
        in_specs=[
            pl.BlockSpec((1, 4, TMo, C), lambda n, t: (n, 0, t, 0)),
            pl.BlockSpec((1, C), lambda n, t: (0, 0)),
            pl.BlockSpec((1, C), lambda n, t: (0, 0)),
            pl.BlockSpec((C, O_pad), lambda n, t: (0, 0)),
        ],
        out_specs=pl.BlockSpec((1, TMo, O_pad), lambda n, t: (n, t, 0)),
        compiler_params=pltpu.CompilerParams(
            dimension_semantics=("parallel", "parallel"),
            vmem_limit_bytes=vmem_bytes),
    )(x_win,
      scale.reshape(1, C).astype(jnp.float32),
      bias.reshape(1, C).astype(jnp.float32),
      w)

    # Drop spatial + lane padding; back to NCHW / f32 for parity with PyTorch.
    out = out_flat[:, :HoWo, :O].reshape(N, Ho, Wo, O)
    return jnp.transpose(out, (0, 3, 1, 2)).astype(jnp.float32)


def transition_reference(x, gamma, beta, mean, var, sel_idx, conv_w, eps=1e-5):
    """Pure-JAX f32 reference mirroring the PyTorch forward (conv then pool)."""
    y = (x - mean[None, :, None, None]) / jnp.sqrt(var[None, :, None, None] + eps)
    y = y * gamma[None, :, None, None] + beta[None, :, None, None]
    sel = np.flatnonzero(np.asarray(sel_idx))
    y = y[:, sel, :, :]
    y = jnp.maximum(y, 0.0)
    O = conv_w.shape[0]
    z = jnp.einsum('nchw,oc->nohw', y, conv_w.reshape(O, -1))
    N, _, H, W = z.shape
    return z.reshape(N, O, H // 2, 2, W // 2, 2).mean(axis=(3, 5))


if __name__ == "__main__":
    inplanes, cfg, outplanes = 4, 4, 8     # indexes init to ones -> cfg == inplanes
    N, H, W = 2, 16, 16

    key = jax.random.PRNGKey(0)
    k_x, k_g, k_b, k_m, k_v, k_w = jax.random.split(key, 6)

    x = jax.random.normal(k_x, (N, inplanes, H, W), dtype=jnp.float32)

    gamma = jax.random.uniform(k_g, (inplanes,), jnp.float32, 0.5, 1.5)
    beta = jax.random.normal(k_b, (inplanes,), jnp.float32) * 0.1
    running_mean = jax.random.normal(k_m, (inplanes,), jnp.float32) * 0.1
    running_var = jax.random.uniform(k_v, (inplanes,), jnp.float32, 0.5, 1.5)
    select_indexes = jnp.ones((inplanes,), jnp.float32)     # ChannelSelection param
    conv_w = jax.random.normal(k_w, (outplanes, cfg, 1, 1), jnp.float32) * 0.1

    out = transition_forward(x, gamma, beta, running_mean, running_var,
                             select_indexes, conv_w)
    out = jax.block_until_ready(out)

    ref = transition_reference(x, gamma, beta, running_mean, running_var,
                               select_indexes, conv_w)
    assert out.shape == (N, outplanes, H // 2, W // 2), out.shape
    # Tolerance accounts for bf16 activation/weight/output (f32 accumulation
    # and f32 BN/ReLU math) plus the pool-before-conv reassociation;
    # structure/indexing errors would be O(1).
    np.testing.assert_allclose(np.asarray(out), np.asarray(ref),
                               rtol=3e-2, atol=3e-2)
    print("KERNEL_OK")
</pallas_src>

<mosaic_0001>
module attributes {stable_mosaic.version = 11 : i64} {
  func.func @transition_kernel(%arg0: i32, %arg1: i32, %arg2: memref<1x4x64x4xbf16, #tpu.memory_space<vmem>>, %arg3: memref<1x4xf32, #tpu.memory_space<vmem>>, %arg4: memref<1x4xf32, #tpu.memory_space<vmem>>, %arg5: memref<4x128xbf16, #tpu.memory_space<vmem>>, %arg6: memref<1x64x128xbf16, #tpu.memory_space<vmem>>) attributes {dimension_semantics = [#tpu.dimension_semantics<parallel>, #tpu.dimension_semantics<parallel>], iteration_bounds = array<i64: 2, 1>, scalar_prefetch = 0 : i64, scratch_operands = 0 : i64, tpu.core_type = #tpu.core_type<tc>, window_params = [{transform_indices = @transform_0, window_bounds = array<i64: 1, 4, 64, 4>}, {pipeline_mode = #tpu.pipeline_mode<synchronous>, transform_indices = @transform_1, window_bounds = array<i64: 1, 4>}, {pipeline_mode = #tpu.pipeline_mode<synchronous>, transform_indices = @transform_2, window_bounds = array<i64: 1, 4>}, {pipeline_mode = #tpu.pipeline_mode<synchronous>, transform_indices = @transform_3, window_bounds = array<i64: 4, 128>}, {transform_indices = @transform_4, window_bounds = array<i64: 1, 64, 128>}]} {
    %c0 = arith.constant 0 : index
    %c0_0 = arith.constant 0 : index
    %0 = vector.load %arg3[%c0, %c0_0] : memref<1x4xf32, #tpu.memory_space<vmem>>, vector<1x4xf32>
    %c0_1 = arith.constant 0 : index
    %c0_2 = arith.constant 0 : index
    %1 = vector.load %arg4[%c0_1, %c0_2] : memref<1x4xf32, #tpu.memory_space<vmem>>, vector<1x4xf32>
    %c0_3 = arith.constant 0 : index
    %c0_4 = arith.constant 0 : index
    %c0_5 = arith.constant 0 : index
    %c0_6 = arith.constant 0 : index
    %2 = vector.load %arg2[%c0_3, %c0_4, %c0_5, %c0_6] : memref<1x4x64x4xbf16, #tpu.memory_space<vmem>>, vector<1x1x64x4xbf16>
    %3 = vector.shape_cast %2 : vector<1x1x64x4xbf16> to vector<64x4xbf16>
    %4 = arith.extf %3 : vector<64x4xbf16> to vector<64x4xf32>
    %5 = vector.broadcast %0 : vector<1x4xf32> to vector<64x4xf32>
    %6 = arith.mulf %4, %5 : vector<64x4xf32>
    %7 = vector.broadcast %1 : vector<1x4xf32> to vector<64x4xf32>
    %8 = arith.addf %6, %7 : vector<64x4xf32>
    %cst = arith.constant 0.000000e+00 : f32
    %9 = vector.broadcast %cst : f32 to vector<64x4xf32>
    %10 = arith.maximumf %8, %9 : vector<64x4xf32>
    %c0_7 = arith.constant 0 : index
    %c1 = arith.constant 1 : index
    %c0_8 = arith.constant 0 : index
    %c0_9 = arith.constant 0 : index
    %11 = vector.load %arg2[%c0_7, %c1, %c0_8, %c0_9] : memref<1x4x64x4xbf16, #tpu.memory_space<vmem>>, vector<1x1x64x4xbf16>
    %12 = vector.shape_cast %11 : vector<1x1x64x4xbf16> to vector<64x4xbf16>
    %13 = arith.extf %12 : vector<64x4xbf16> to vector<64x4xf32>
    %14 = vector.broadcast %0 : vector<1x4xf32> to vector<64x4xf32>
    %15 = arith.mulf %13, %14 : vector<64x4xf32>
    %16 = vector.broadcast %1 : vector<1x4xf32> to vector<64x4xf32>
    %17 = arith.addf %15, %16 : vector<64x4xf32>
    %cst_10 = arith.constant 0.000000e+00 : f32
    %18 = vector.broadcast %cst_10 : f32 to vector<64x4xf32>
    %19 = arith.maximumf %17, %18 : vector<64x4xf32>
    %20 = arith.addf %10, %19 : vector<64x4xf32>
    %c0_11 = arith.constant 0 : index
    %c2 = arith.constant 2 : index
    %c0_12 = arith.constant 0 : index
    %c0_13 = arith.constant 0 : index
    %21 = vector.load %arg2[%c0_11, %c2, %c0_12, %c0_13] : memref<1x4x64x4xbf16, #tpu.memory_space<vmem>>, vector<1x1x64x4xbf16>
    %22 = vector.shape_cast %21 : vector<1x1x64x4xbf16> to vector<64x4xbf16>
    %23 = arith.extf %22 : vector<64x4xbf16> to vector<64x4xf32>
    %24 = vector.broadcast %0 : vector<1x4xf32> to vector<64x4xf32>
    %25 = arith.mulf %23, %24 : vector<64x4xf32>
    %26 = vector.broadcast %1 : vector<1x4xf32> to vector<64x4xf32>
    %27 = arith.addf %25, %26 : vector<64x4xf32>
    %cst_14 = arith.constant 0.000000e+00 : f32
    %28 = vector.broadcast %cst_14 : f32 to vector<64x4xf32>
    %29 = arith.maximumf %27, %28 : vector<64x4xf32>
    %30 = arith.addf %20, %29 : vector<64x4xf32>
    %c0_15 = arith.constant 0 : index
    %c3 = arith.constant 3 : index
    %c0_16 = arith.constant 0 : index
    %c0_17 = arith.constant 0 : index
    %31 = vector.load %arg2[%c0_15, %c3, %c0_16, %c0_17] : memref<1x4x64x4xbf16, #tpu.memory_space<vmem>>, vector<1x1x64x4xbf16>
    %32 = vector.shape_cast %31 : vector<1x1x64x4xbf16> to vector<64x4xbf16>
    %33 = arith.extf %32 : vector<64x4xbf16> to vector<64x4xf32>
    %34 = vector.broadcast %0 : vector<1x4xf32> to vector<64x4xf32>
    %35 = arith.mulf %33, %34 : vector<64x4xf32>
    %36 = vector.broadcast %1 : vector<1x4xf32> to vector<64x4xf32>
    %37 = arith.addf %35, %36 : vector<64x4xf32>
    %cst_18 = arith.constant 0.000000e+00 : f32
    %38 = vector.broadcast %cst_18 : f32 to vector<64x4xf32>
    %39 = arith.maximumf %37, %38 : vector<64x4xf32>
    %40 = arith.addf %30, %39 : vector<64x4xf32>
    %41 = arith.truncf %40 : vector<64x4xf32> to vector<64x4xbf16>
    %c0_19 = arith.constant 0 : index
    %c0_20 = arith.constant 0 : index
    %42 = vector.load %arg5[%c0_19, %c0_20] : memref<4x128xbf16, #tpu.memory_space<vmem>>, vector<4x128xbf16>
    %cst_21 = arith.constant dense<0.000000e+00> : vector<64x128xf32>
    %43 = tpu.matmul %41, %42, %cst_21 {dimension_numbers = #tpu.dot_dimension_numbers<[1], [0], [0], [1], [0, 0, 1, 1], [], []>} : vector<64x4xbf16>, vector<4x128xbf16>, vector<64x128xf32> -> vector<64x128xf32>
    %44 = arith.truncf %43 : vector<64x128xf32> to vector<64x128xbf16>
    %c0_22 = arith.constant 0 : index
    %c0_23 = arith.constant 0 : index
    %c0_24 = arith.constant 0 : index
    %45 = vector.load %arg6[%c0_22, %c0_23, %c0_24] : memref<1x64x128xbf16, #tpu.memory_space<vmem>>, vector<1x64x128xbf16>
    %46 = vector.shape_cast %45 : vector<1x64x128xbf16> to vector<64x128xbf16>
    %47 = vector.shape_cast %44 : vector<64x128xbf16> to vector<1x64x128xbf16>
    tpu.vector_store %arg6[%c0_22, %c0_23, %c0_24], %47 {strides = array<i32>} : memref<1x64x128xbf16, #tpu.memory_space<vmem>>, vector<1x64x128xbf16>,
    return
  }
  func.func @transform_0(%arg0: i32, %arg1: i32) -> (i32, i32, i32, i32) {
    %c0_i32 = arith.constant 0 : i32
    %c0_i32_0 = arith.constant 0 : i32
    %c0_i32_1 = arith.constant 0 : i32
    return %arg0, %c0_i32, %arg1, %c0_i32_0 : i32, i32, i32, i32
  }
  func.func @transform_1(%arg0: i32, %arg1: i32) -> (i32, i32) {
    %c0_i32 = arith.constant 0 : i32
    %c0_i32_0 = arith.constant 0 : i32
    %c0_i32_1 = arith.constant 0 : i32
    return %c0_i32, %c0_i32_0 : i32, i32
  }
  func.func @transform_2(%arg0: i32, %arg1: i32) -> (i32, i32) {
    %c0_i32 = arith.constant 0 : i32
    %c0_i32_0 = arith.constant 0 : i32
    %c0_i32_1 = arith.constant 0 : i32
    return %c0_i32, %c0_i32_0 : i32, i32
  }
  func.func @transform_3(%arg0: i32, %arg1: i32) -> (i32, i32) {
    %c0_i32 = arith.constant 0 : i32
    %c0_i32_0 = arith.constant 0 : i32
    %c0_i32_1 = arith.constant 0 : i32
    return %c0_i32, %c0_i32_0 : i32, i32
  }
  func.func @transform_4(%arg0: i32, %arg1: i32) -> (i32, i32, i32) {
    %c0_i32 = arith.constant 0 : i32
    %c0_i32_0 = arith.constant 0 : i32
    return %arg0, %arg1, %c0_i32 : i32, i32, i32
  }
}

</mosaic_0001>

<bundles_post_ra>
// kernel: tpu_custom_call.1
= control target key start
LH: loop header
LB: loop body
LE: loop exit
PB: predicated region body
PF: predicated region fallthrough
CT: control target
= control target key end

     0   :  { %9 = vsyncpa [#allocation3], 0  ;;  %s1097_s0 = inlined_call_operand.vmem [shape: bf16[2,4,64,4], index: 0, kind: input, shape index: {}]   ;;  %s1098_s1 = inlined_call_operand.vmem [shape: f32[1,4], index: 1, kind: input, shape index: {}]   ;;  %s1099_s2 = inlined_call_operand.vmem [shape: f32[1,4], index: 2, kind: input, shape index: {}]   ;;  %s1100_s3 = inlined_call_operand.vmem [shape: bf16[4,128], index: 3, kind: input, shape index: {}]   ;;  %s1101_s4 = inlined_call_operand.hbm [shape: bf16[2,64,128], index: 4, kind: output, shape index: {}]  }
   0x1   :  { %11 = vsyncpa [#allocation3 + $0x1], 0  ;;  %s901_s15 = smov 0   ;;  %s903_s16 = smov 0  }
   0x2   :  { %s905_s17 = smov 0   ;;  %s907_s18 = smov 0  }
   0x3   :  { %s909_s19 = smov 0   ;;  %s911_s20 = smov 0  }
   0x4 LB: > { %s587_s21 = sadd.s32 4294967295, %s872_s20   ;;  %s588_s22 = sadd.s32 4294967294, %s872_s20   ;;  %s872_s20 = sphi %s911_s20, %s17_s20   ;;  %s868_s19 = sphi %s909_s19, %s1108_s19   ;;  %s864_s18 = sphi %s907_s18, %s1107_s18   ;;  %s860_s17 = sphi %s905_s17, %s1106_s17   ;;  %s856_s16 = sphi %s903_s16, %s1105_s16   ;;  %s852_s15 = sphi %s901_s15, %s1104_s15  }
   0x5   : > { %s29_s23 = sadd.s32 1, %s868_s19  ;;  %s129_s24 = sadd.s32 1, %s860_s17 }
   0x6   : > { %p31_p0 = scmp.ge.s32.totalorder %s29_s23, 2  ;;  %p139_p1 = scmp.ne.s32.totalorder %s860_s17, %s856_s16 }
   0x7   : > { %p140_p2 = scmp.eq.s32.totalorder %s587_s21, 1  ;;  %p145_p3 = scmp.ne.s32.totalorder %s856_s16, %s852_s15 }
   0x8   : > { %s1110_s23 = smov (%p31_p0, %s29_s23), 0  ;;  %p146_p5 = scmp.eq.s32.totalorder %s588_s22, 1 }
   0x9   : > { %p941_p4 = por %p140_p2, %p139_p1  ;;  %s124_s26 = ssub.s32 %s868_s19, %s1110_s23 }
   0xa   : > { %p591_p6 = scmp.ge.s32.totalorder %s872_s20, 1  ;;  %p127_p7 = scmp.eq.s32.totalorder %s124_s26, 0 }
   0xb   : > { %p948_p8 = por %p146_p5, %p145_p3  ;;  %p186_p9 = scmp.lt.s32.totalorder %s872_s20, 3 }
   0xc   : > { %s954_s28 = scalar_select %p127_p7, %s860_s17, %s129_s24  }
   0xd   : > { %p187_p10 = pnand %p591_p6, %p186_p9 }
   0xe   : > { %p217_p11 = scmp.lt.s32.totalorder (!%p187_p10), %s864_s18, 1  ;;  %s213_s14 = sand.u32 (!%p187_p10), 1, %s856_s16  }
   0xf   : > { %190 = sbr.rel (%p187_p10) target bundleno = 217 (0xd9), region = 36  ;;  %s592_s21 = sshll.u32 (!%p187_p10), %s213_s14, 5 }
  0x10   : > { %s215_s22 = scalar_lea.vmem (!%p187_p10), [#allocation2], %s592_s21  ;;  %s629_s24 = sshll.u32 (!%p187_p10), %s864_s18, 5 }
  0x11   : > { %s504_s30 = scalar_lea.hbm (!%p187_p10), %s1101_s4, %s629_s24  ;;  %s491_s7 = scalar_lea.sflag (!%p187_p10), [#allocation3], %s213_s14 }
  0x12   : > { %s814_s11 = scalar_lea.hbm (!%p187_p10), %s1101_s4, 64 }
  0x14   : > { %v427_v0 = vld [vmem:[%s1100_s3] sm:$0x3]  ;;  %vm441_vm0 = vcmask 1041408   ;;  %s218_s5 = scalar_select %p217_p11, %s864_s18, 1  ;;  %vm428_vm1 = vcmask 31744  }
  0x15   : > { %v443_v1 = vsel %vm441_vm0, %v427_v0, 0  ;;  %v969_v2 = vld [vmem:[%s1098_s1] ss:$0 sm:$0xff] }
  0x16   : > { %452 = vmatpush.bf16.msra.mxu0 %v443_v1  ;;  %732 = vmatpush.bf16.msra.mxu1 %v443_v1  ;;  %s628_s6 = sshll.u32 %s218_s5, 7  ;;  %v977_v8 = vld [vmem:[%s1099_s2] ss:$0 sm:$0xff]  ;;  %s505_s5 = sshll.u32 %s215_s22, 4  ;;  %s506_s5 = int_to_ptr.vmem [resolvable:$true] %s505_s5 }
  0x17   : > { %733 = vmatpush.bf16.msra.mxu2 %v443_v1  ;;  %734 = vmatpush.bf16.msra.mxu3 %v443_v1  ;;  %s964_s9 = scalar_lea.vmem %s1097_s0, %s628_s6  ;;  %s507_s6 = sshll.u32 %s504_s30, 4  ;;  %s508_s6 = int_to_ptr.hbm [resolvable:$true] %s507_s6 }
  0x18   : > { %v631_v3 = vld [vmem:[%s964_s9] sm:$0xff]   ;;  %v714_v32 = vld [vmem:[%s964_s9 + $0x8] sm:$0xff]   ;;  %s808_s8 = sshra.s32 %s508_s6, 4  ;;  %s809_s8 = int_to_ptr.hbm [resolvable:$true] %s808_s8 }
  0x19   : > { %v717_v4 = vld [vmem:[%s964_s9 + $0x20] sm:$0xff]   ;;  %v632_v6 = vunpack.c.l.bf16 %v631_v3  ;;  %v633_v7 = vunpack.c.h.bf16 %v631_v3  ;;  %v718_v37 = vld [vmem:[%s964_s9 + $0x28] sm:$0xff]   ;;  %v636_v45 = vunpack.c.l.bf16 %v714_v32  ;;  %v637_v46 = vunpack.c.h.bf16 %v714_v32  ;;  %p815_p1 = scmp.lt.s32.totalorder %s809_s8, %s1101_s4 }
  0x1a   : > { %v721_v5 = vld [vmem:[%s964_s9 + $0x40] sm:$0xff]   ;;  %v648_v9 = vunpack.c.l.bf16 %v717_v4  ;;  %v649_v10 = vunpack.c.h.bf16 %v717_v4  ;;  %v722_v38 = vld [vmem:[%s964_s9 + $0x48] sm:$0xff]   ;;  %v652_v47 = vunpack.c.l.bf16 %v718_v37  ;;  %v653_v48 = vunpack.c.h.bf16 %v718_v37 }
  0x1b   : > { %v725_v11 = vld [vmem:[%s964_s9 + $0x60] sm:$0xff]   ;;  %v664_v12 = vunpack.c.l.bf16 %v721_v5  ;;  %v665_v13 = vunpack.c.h.bf16 %v721_v5  ;;  %v249_v16 = vmul.f32 %v969_v2, %v632_v6  ;;  %v250_v17 = vmul.f32 %v969_v2, %v633_v7  ;;  %v726_v59 = vld [vmem:[%s964_s9 + $0x68] sm:$0xff]   ;;  %v715_v5 = vld [vmem:[%s964_s9 + $0x10] sm:$0xff]  }
  0x1c   : > { %v680_v14 = vunpack.c.l.bf16 %v725_v11  ;;  %v681_v15 = vunpack.c.h.bf16 %v725_v11  ;;  %v293_v18 = vmul.f32 %v969_v2, %v648_v9  ;;  %v294_v19 = vmul.f32 %v969_v2, %v649_v10  ;;  %v719_v11 = vld [vmem:[%s964_s9 + $0x30] sm:$0xff]  }
  0x1d   : > { %v342_v20 = vmul.f32 %v969_v2, %v664_v12  ;;  %v343_v21 = vmul.f32 %v969_v2, %v665_v13  ;;  %v260_v24 = vadd.f32 %v977_v8, %v249_v16  ;;  %v261_v25 = vadd.f32 %v977_v8, %v250_v17 }
  0x1e   : > { %v391_v22 = vmul.f32 %v969_v2, %v680_v14  ;;  %v392_v23 = vmul.f32 %v969_v2, %v681_v15  ;;  %v301_v26 = vadd.f32 %v977_v8, %v293_v18  ;;  %v302_v27 = vadd.f32 %v977_v8, %v294_v19 }
  0x1f   : > { %v350_v28 = vadd.f32 %v977_v8, %v342_v20  ;;  %v351_v29 = vadd.f32 %v977_v8, %v343_v21  ;;  %v268_v33 = vmax.f32 %v260_v24, 0.0  ;;  %v269_v34 = vmax.f32 %v261_v25, 0.0 }
  0x20   : > { %v399_v30 = vadd.f32 %v977_v8, %v391_v22  ;;  %v400_v31 = vadd.f32 %v977_v8, %v392_v23  ;;  %v309_v35 = vmax.f32 %v301_v26, 0.0  ;;  %v310_v36 = vmax.f32 %v302_v27, 0.0 }
  0x21   : > { %v358_v39 = vmax.f32 %v350_v28, 0.0  ;;  %v359_v40 = vmax.f32 %v351_v29, 0.0  ;;  %v668_v49 = vunpack.c.l.bf16 %v722_v38  ;;  %v669_v50 = vunpack.c.h.bf16 %v722_v38  ;;  %v723_v28 = vld [vmem:[%s964_s9 + $0x50] sm:$0xff]  }
  0x22   : > { %v407_v41 = vmax.f32 %v399_v30, 0.0  ;;  %v408_v42 = vmax.f32 %v400_v31, 0.0  ;;  %v317_v43 = vadd.f32 %v309_v35, %v268_v33  ;;  %v318_v44 = vadd.f32 %v310_v36, %v269_v34 }
  0x23   : > { %v251_v53 = vmul.f32 %v969_v2, %v636_v45  ;;  %v252_v54 = vmul.f32 %v969_v2, %v637_v46  ;;  %v295_v55 = vmul.f32 %v969_v2, %v652_v47  ;;  %v296_v56 = vmul.f32 %v969_v2, %v653_v48 }
  0x24   : > { %v366_v51 = vadd.f32 %v358_v39, %v317_v43  ;;  %v367_v52 = vadd.f32 %v359_v40, %v318_v44  ;;  %v344_v57 = vmul.f32 %v969_v2, %v668_v49  ;;  %v345_v58 = vmul.f32 %v969_v2, %v669_v50 }
  0x25   : > { %v262_v62 = vadd.f32 %v977_v8, %v251_v53  ;;  %v263_v63 = vadd.f32 %v977_v8, %v252_v54  ;;  %v303_v0 = vadd.f32 %v977_v8, %v295_v55  ;;  %v304_v1 = vadd.f32 %v977_v8, %v296_v56  ;;  %v720_v55 = vld [vmem:[%s964_s9 + $0x38] sm:$0xff]  }
  0x26   : > { %v415_v60 = vadd.f32 %v407_v41, %v366_v51  ;;  %v416_v61 = vadd.f32 %v408_v42, %v367_v52  ;;  %v352_v3 = vadd.f32 %v977_v8, %v344_v57  ;;  %v353_v4 = vadd.f32 %v977_v8, %v345_v58  ;;  %v727_v41 = vld [vmem:[%s964_s9 + $0x70] sm:$0xff]   ;;  %v716_v42 = vld [vmem:[%s964_s9 + $0x18] sm:$0xff]  }
  0x27   : > { %v270_v7 = vmax.f32 %v262_v62, 0.0  ;;  %v271_v9 = vmax.f32 %v263_v63, 0.0  ;;  %v684_v10 = vunpack.c.l.bf16 %v726_v59  ;;  %v311_v12 = vmax.f32 %v303_v0, 0.0 }
  0x28   : > { %v423_v6 = vpack.c.bf16 %v416_v61, %v415_v60  ;;  %v312_v13 = vmax.f32 %v304_v1, 0.0  ;;  %v360_v14 = vmax.f32 %v352_v3, 0.0  ;;  %v361_v15 = vmax.f32 %v353_v4, 0.0 }
  0x29   : > { %v685_v16 = vunpack.c.h.bf16 %v726_v59  ;;  %v393_v17 = vmul.f32 %v969_v2, %v684_v10  ;;  %v640_v18 = vunpack.c.l.bf16 %v715_v5  ;;  %v641_v19 = vunpack.c.h.bf16 %v715_v5  ;;  %v724_v10 = vld [vmem:[%s964_s9 + $0x58] sm:$0xff]  }
  0x2a   : > { %619 = vmatmul.msk.bf16.vlgmr.msra.gmra.mxu0 %vm428_vm1, %v423_v6  ;;  %v319_v20 = vadd.f32 %v311_v12, %v270_v7  ;;  %v320_v21 = vadd.f32 %v312_v13, %v271_v9  ;;  %v656_v22 = vunpack.c.l.bf16 %v719_v11  ;;  %v657_v23 = vunpack.c.h.bf16 %v719_v11 }
  0x2b   : > { %v394_v24 = vmul.f32 %v969_v2, %v685_v16  ;;  %v401_v25 = vadd.f32 %v977_v8, %v393_v17  ;;  %v253_v26 = vmul.f32 %v969_v2, %v640_v18  ;;  %v254_v27 = vmul.f32 %v969_v2, %v641_v19  ;;  %v728_v19 = vld [vmem:[%s964_s9 + $0x78] sm:$0xff]   ;;  %s810_s9 = scalar_lea.hbm %s809_s8, 32 }
  0x2c   : > { %v368_v29 = vadd.f32 %v360_v14, %v319_v20  ;;  %v369_v30 = vadd.f32 %v361_v15, %v320_v21  ;;  %v297_v31 = vmul.f32 %v969_v2, %v656_v22  ;;  %v298_v32 = vmul.f32 %v969_v2, %v657_v23  ;;  %p811_p12 = scmp.ne.s32.totalorder %s809_s8, %s810_s9  ;;  %p816_p2 = scmp.lt.s32.totalorder %s814_s11, %s810_s9 }
  0x2d   : > { %v402_v33 = vadd.f32 %v977_v8, %v394_v24  ;;  %v409_v34 = vmax.f32 %v401_v25, 0.0  ;;  %v264_v35 = vadd.f32 %v977_v8, %v253_v26  ;;  %v265_v36 = vadd.f32 %v977_v8, %v254_v27 }
  0x2e   : > { %v305_v37 = vadd.f32 %v977_v8, %v297_v31  ;;  %v306_v38 = vadd.f32 %v977_v8, %v298_v32  ;;  %v672_v39 = vunpack.c.l.bf16 %v723_v28  ;;  %v673_v40 = vunpack.c.h.bf16 %v723_v28  ;;  %p812_p13 = pnand %p811_p12, %p941_p4  ;;  %p817_p3 = por %p816_p2, %p815_p1 }
  0x2f   : > { %v410_v43 = vmax.f32 %v402_v33, 0.0  ;;  %v417_v44 = vadd.f32 %v409_v34, %v368_v29  ;;  %v272_v45 = vmax.f32 %v264_v35, 0.0  ;;  %v273_v46 = vmax.f32 %v265_v36, 0.0 }
  0x30   : > { %v313_v47 = vmax.f32 %v305_v37, 0.0  ;;  %v314_v48 = vmax.f32 %v306_v38, 0.0  ;;  %v346_v49 = vmul.f32 %v969_v2, %v672_v39  ;;  %v347_v50 = vmul.f32 %v969_v2, %v673_v40  ;;  %p813_p0 = pneg %p812_p13 }
  0x31   : > { %v418_v51 = vadd.f32 %v410_v43, %v369_v30  ;;  %v688_v52 = vunpack.c.l.bf16 %v727_v41  ;;  %v689_v53 = vunpack.c.h.bf16 %v727_v41  ;;  %v644_v54 = vunpack.c.l.bf16 %v716_v42 }
  0x32   : > { %v321_v56 = vadd.f32 %v313_v47, %v272_v45  ;;  %v322_v57 = vadd.f32 %v314_v48, %v273_v46  ;;  %v354_v58 = vadd.f32 %v977_v8, %v346_v49  ;;  %v355_v59 = vadd.f32 %v977_v8, %v347_v50  ;;  %p818_p5 = pnand %p817_p3, %p813_p0 }
  0x33   : > { %v424_v60 = vpack.c.bf16 %v418_v51, %v417_v44  ;;  %v395_v61 = vmul.f32 %v969_v2, %v688_v52  ;;  %v396_v62 = vmul.f32 %v969_v2, %v689_v53  ;;  %v645_v63 = vunpack.c.h.bf16 %v716_v42 }
  0x34   : > { %v362_v0 = vmax.f32 %v354_v58, 0.0  ;;  %v363_v1 = vmax.f32 %v355_v59, 0.0  ;;  %v255_v3 = vmul.f32 %v969_v2, %v644_v54  ;;  %v660_v4 = vunpack.c.l.bf16 %v720_v55 }
  0x35   : > { %620 = vmatmul.msk.bf16.vlgmr.msra.gmra.mxu1 %vm428_vm1, %v424_v60  ;;  %v403_v5 = vadd.f32 %v977_v8, %v395_v61  ;;  %v404_v6 = vadd.f32 %v977_v8, %v396_v62  ;;  %v256_v7 = vmul.f32 %v969_v2, %v645_v63  ;;  %v661_v9 = vunpack.c.h.bf16 %v720_v55 }
  0x36   : > { %v370_v11 = vadd.f32 %v362_v0, %v321_v56  ;;  %v371_v12 = vadd.f32 %v363_v1, %v322_v57  ;;  %v266_v13 = vadd.f32 %v977_v8, %v255_v3  ;;  %v299_v14 = vmul.f32 %v969_v2, %v660_v4 }
  0x37   : > { %v411_v15 = vmax.f32 %v403_v5, 0.0  ;;  %v412_v16 = vmax.f32 %v404_v6, 0.0  ;;  %v267_v17 = vadd.f32 %v977_v8, %v256_v7  ;;  %v300_v18 = vmul.f32 %v969_v2, %v661_v9 }
  0x38   : > { %v274_v20 = vmax.f32 %v266_v13, 0.0  ;;  %v307_v21 = vadd.f32 %v977_v8, %v299_v14  ;;  %v676_v22 = vunpack.c.l.bf16 %v724_v10  ;;  %v677_v23 = vunpack.c.h.bf16 %v724_v10 }
  0x39   : > { %v419_v24 = vadd.f32 %v411_v15, %v370_v11  ;;  %v420_v25 = vadd.f32 %v412_v16, %v371_v12  ;;  %v275_v26 = vmax.f32 %v267_v17, 0.0  ;;  %v308_v27 = vadd.f32 %v977_v8, %v300_v18 }
  0x3a   : > { %v315_v28 = vmax.f32 %v307_v21, 0.0  ;;  %v348_v29 = vmul.f32 %v969_v2, %v676_v22  ;;  %v349_v30 = vmul.f32 %v969_v2, %v677_v23  ;;  %v692_v31 = vunpack.c.l.bf16 %v728_v19 }
  0x3b   : > { %v425_v32 = vpack.c.bf16 %v420_v25, %v419_v24  ;;  %v316_v33 = vmax.f32 %v308_v27, 0.0  ;;  %v693_v34 = vunpack.c.h.bf16 %v728_v19 }
  0x3c   : > { %v323_v35 = vadd.f32 %v315_v28, %v274_v20  ;;  %v356_v36 = vadd.f32 %v977_v8, %v348_v29  ;;  %v357_v37 = vadd.f32 %v977_v8, %v349_v30  ;;  %v397_v38 = vmul.f32 %v969_v2, %v692_v31 }
  0x3d   : > { %621 = vmatmul.msk.bf16.vlgmr.msra.gmra.mxu2 %vm428_vm1, %v425_v32  ;;  %v324_v39 = vadd.f32 %v316_v33, %v275_v26  ;;  %v398_v40 = vmul.f32 %v969_v2, %v693_v34 }
  0x3e   : > { %v364_v41 = vmax.f32 %v356_v36, 0.0  ;;  %v365_v42 = vmax.f32 %v357_v37, 0.0  ;;  %v405_v43 = vadd.f32 %v977_v8, %v397_v38 }
  0x3f   : > { %v406_v44 = vadd.f32 %v977_v8, %v398_v40 }
  0x40   : > { %v372_v45 = vadd.f32 %v364_v41, %v323_v35  ;;  %v373_v46 = vadd.f32 %v365_v42, %v324_v39  ;;  %v413_v47 = vmax.f32 %v405_v43, 0.0 }
  0x41   : > { %v414_v48 = vmax.f32 %v406_v44, 0.0 }
  0x42   : > { %v421_v49 = vadd.f32 %v413_v47, %v372_v45 }
  0x43   : > { %v422_v50 = vadd.f32 %v414_v48, %v373_v46 }
  0x45   : > { %v426_v51 = vpack.c.bf16 %v422_v50, %v421_v49 }
  0x47   : > { %622 = vmatmul.msk.bf16.vlgmr.msra.gmra.mxu3 %vm428_vm1, %v426_v51 }
  0xa7   : > { %v454_v52 = vpop.f32.mrf.mxu0 }
  0xaf   : > { %v456_v2 = vpop.f32.mrf.mxu0 }
  0xb0   : > { %v697_v53 = vpack.c.bf16 %v456_v2, %v454_v52 }
  0xb2   : > { %698 = vst [vmem:[%s215_s22] sm:$0xff] %v697_v53   ;;  %v459_v54 = vpop.f32.mrf.mxu1 }
  0xba   : > { %v461_v55 = vpop.f32.mrf.mxu1 }
  0xbb   : > { %v702_v8 = vpack.c.bf16 %v461_v55, %v459_v54 }
  0xbd   : > { %729 = vst [vmem:[%s215_s22 + $0x8] sm:$0xff] %v702_v8  }
  0xc0   : > { %v464_v56 = vpop.f32.mrf.mxu2 }
  0xc8   : > { %v466_v57 = vpop.f32.mrf.mxu2 }
  0xc9   : > { %v707_v58 = vpack.c.bf16 %v466_v57, %v464_v56 }
  0xca   : > { %v469_v59 = vpop.f32.mrf.mxu3 }
  0xcb   : > { %730 = vst [vmem:[%s215_s22 + $0x10] sm:$0xff] %v707_v58  }
  0xd2   : > { %v471_v60 = vpop.f32.mrf.mxu3 }
  0xd3   : > { %v712_v61 = vpack.c.bf16 %v471_v60, %v469_v59 }
  0xd5   : > { %731 = vst [vmem:[%s215_s22 + $0x18] sm:$0xff] %v712_v61  }
  0xd6   : > { %821 = shalt.err (!%p818_p5)
}
  0xd7   : > { %s874_s14 = smov 64   ;;  %s875_s21 = smov 4  }
  0xd8   : > { %735 = dma.vmem_to_hbm [thread:$0]  (%p941_p4), %s506_s5, 512, %s508_s6, %s491_s7, %s874_s14, %s874_s14, %s875_s21  }
  0xd9 PF: > { %p741_p6 = scmp.ge.s32.totalorder %s872_s20, 2  ;;  %s522_s22 = sand.u32 1, %s852_s15  }
  0xda   : > { %s523_s24 = scalar_lea.sflag [#allocation3], %s522_s22 }
  0xdb   : > { %p738_p7 = pnand %p741_p6, %p948_p8 }
  0xdd   : > { %p739_p9 = pneg %p738_p7 }
  0xdf   : > { %847 = dma.done.wait (%p739_p9), %s523_s24, 512  }
  0xe0   : > { %849 = vsyncadd (%p739_p9), %s523_s24, 4294966784  ;;  %s17_s20 = sadd.s32 1, %s872_s20   ;;  %s1104_s15 = smov %s856_s16 }
  0xe1   : > { %p14_p10 = scmp.ge.s32.totalorder %s17_s20, 4   ;;  %s1105_s16 = smov %s860_s17 }
  0xe2   : > { %s1106_s17 = smov %s954_s28  ;;  %s1107_s18 = smov %s868_s19 }
  0xe3   : > { %s1108_s19 = smov %s1110_s23  ;;  %16 = sbr.rel (!%p14_p10) target bundleno = 4 (0x4), region = 74 }
  0xe8   :  { %529 = vsyncpa [#allocation3], 1 }
  0xe9   :  { %531 = vsyncpa [#allocation3 + $0x1], 1 }

</bundles_post_ra>
